<compile_context>
chip_gen: v7x
topology: tpu7x:2x2x1
jax: 0.10.0
libtpu: 0.0.40
codegen_flags: <defaults>
</compile_context>

<pallas_src>
import jax
import jax.numpy as jnp
from jax.experimental import pallas as pl
from jax.experimental.pallas import tpu as pltpu


# ----------------------------- model dimensions -----------------------------
NUM_TEMPERATURES = 1
NUM_LOSSES = 3
NUM_TEMP_BINS = 11
NUM_LOSS_BINS = 11

NUM_INPUT_TEMP_FEATURES = NUM_TEMPERATURES + NUM_LOSSES                  # 4
NUM_SHARED_TEMP_FEATURES = NUM_TEMP_BINS * 2                             # 22
NUM_OUTPUT_FEATURES = NUM_TEMPERATURES + NUM_LOSSES                      # 4

# Padded (layout-friendly) dims: features 4 -> 8 sublanes, hidden 22 -> 32.
FEAT_PAD = 8
HID_PAD = 32

LANE_MULT = 256       # lane tile granularity (multiple of 256 for v6e/v7x MXU)
TILE_B_MAX = 8192     # max lane tile; 2 bufs x (8+8)x8192 f32 ~= 1 MiB of VMEM


def _round_up(x, m):
    return (x + m - 1) // m * m


# ------------------------------- Pallas kernel ------------------------------
def _mlp_kernel(xT_ref, w1T_ref, b1_ref, w2T_ref, b2_ref, oT_ref):
    # Batch on lanes: everything below is (features, TILE_B) tiles.
    xT = xT_ref[...]                                                  # (8, TB)
    h = jnp.dot(w1T_ref[...], xT, preferred_element_type=jnp.float32)  # (32, TB)
    h = jnp.maximum(h + b1_ref[...], 0.0)                             # bias + ReLU
    y = jnp.dot(w2T_ref[...], h, preferred_element_type=jnp.float32)  # (8, TB)
    oT_ref[...] = (y + b2_ref[...]).astype(oT_ref.dtype)


# --------------------- one-time weight preprocessing -------------------------
def prepare_params(w1, b1, w2, b2):
    """Transpose + zero-pad weights once, outside the hot path.

    w1: (4, 22), b1: (1, 22), w2: (22, 4), b2: (1, 4)  ->
    w1T: (32, 8), b1p: (32, 1), w2T: (8, 32), b2p: (8, 1)
    Zero padding is exact: padded input rows are 0, padded hidden units get
    bias 0 -> ReLU 0 -> multiplied by zero W2 columns -> contribute nothing.
    """
    w1T = jnp.zeros((HID_PAD, FEAT_PAD), jnp.float32)
    w1T = w1T.at[:NUM_SHARED_TEMP_FEATURES, :NUM_INPUT_TEMP_FEATURES].set(w1.T)
    b1p = jnp.zeros((HID_PAD, 1), jnp.float32)
    b1p = b1p.at[:NUM_SHARED_TEMP_FEATURES, 0].set(b1.reshape(-1))
    w2T = jnp.zeros((FEAT_PAD, HID_PAD), jnp.float32)
    w2T = w2T.at[:NUM_OUTPUT_FEATURES, :NUM_SHARED_TEMP_FEATURES].set(w2.T)
    b2p = jnp.zeros((FEAT_PAD, 1), jnp.float32)
    b2p = b2p.at[:NUM_OUTPUT_FEATURES, 0].set(b2.reshape(-1))
    return w1T, b1p, w2T, b2p


# ------------------------------- forward pass -------------------------------
def heat_therapy_forward(x, w1T, b1p, w2T, b2p):
    """Pallas forward pass. x: (B, 4) float32 -> (B, 4) float32."""
    if x.ndim == 1:
        x = x[None, :]
    assert x.ndim == 2, "Input tensor must have 2 dimensions."
    assert x.dtype == jnp.float32, "Tensor must be of type float32"
    assert x.shape[1] == NUM_INPUT_TEMP_FEATURES, "Input tensor must have 4 features."

    batch = x.shape[0]
    tile_b = min(TILE_B_MAX, _round_up(max(batch, 1), LANE_MULT))
    b_pad = _round_up(batch, tile_b)
    grid_b = b_pad // tile_b

    # Present batch on the lane axis, zero-padded to the tile grid.
    xT = jnp.zeros((FEAT_PAD, b_pad), jnp.float32)
    xT = xT.at[:NUM_INPUT_TEMP_FEATURES, :batch].set(x.T)

    flops = 2 * batch * (NUM_INPUT_TEMP_FEATURES * NUM_SHARED_TEMP_FEATURES
                         + NUM_SHARED_TEMP_FEATURES * NUM_OUTPUT_FEATURES)
    bytes_accessed = 4 * (xT.size + FEAT_PAD * b_pad
                          + w1T.size + b1p.size + w2T.size + b2p.size)

    outT = pl.pallas_call(
        _mlp_kernel,
        out_shape=jax.ShapeDtypeStruct((FEAT_PAD, b_pad), jnp.float32),
        grid=(grid_b,),
        in_specs=[
            pl.BlockSpec((FEAT_PAD, tile_b), lambda i: (0, i)),   # xT tile
            pl.BlockSpec((HID_PAD, FEAT_PAD), lambda i: (0, 0)),  # W1^T resident
            pl.BlockSpec((HID_PAD, 1), lambda i: (0, 0)),         # b1 resident
            pl.BlockSpec((FEAT_PAD, HID_PAD), lambda i: (0, 0)),  # W2^T resident
            pl.BlockSpec((FEAT_PAD, 1), lambda i: (0, 0)),        # b2 resident
        ],
        out_specs=pl.BlockSpec((FEAT_PAD, tile_b), lambda i: (0, i)),
        compiler_params=pltpu.CompilerParams(
            dimension_semantics=("parallel",)),
        cost_estimate=pl.CostEstimate(flops=flops, transcendentals=0,
                                      bytes_accessed=bytes_accessed),
    )(xT, w1T, b1p, w2T, b2p)

    # Strip padding and return in the original (B, 4) layout.
    return outT[:NUM_OUTPUT_FEATURES, :batch].T


# ------------------------- deterministic param init -------------------------
def init_params(key):
    k1, k2, k3, k4 = jax.random.split(key, 4)
    # Mimic PyTorch nn.Linear default: U(-1/sqrt(fan_in), 1/sqrt(fan_in)).
    bound1 = 1.0 / (NUM_INPUT_TEMP_FEATURES ** 0.5)
    bound2 = 1.0 / (NUM_SHARED_TEMP_FEATURES ** 0.5)
    w1 = jax.random.uniform(k1, (NUM_INPUT_TEMP_FEATURES, NUM_SHARED_TEMP_FEATURES),
                            jnp.float32, -bound1, bound1)
    b1 = jax.random.uniform(k2, (1, NUM_SHARED_TEMP_FEATURES),
                            jnp.float32, -bound1, bound1)
    w2 = jax.random.uniform(k3, (NUM_SHARED_TEMP_FEATURES, NUM_OUTPUT_FEATURES),
                            jnp.float32, -bound2, bound2)
    b2 = jax.random.uniform(k4, (1, NUM_OUTPUT_FEATURES),
                            jnp.float32, -bound2, bound2)
    return w1, b1, w2, b2


def reference_forward(x, w1, b1, w2, b2):
    h = jnp.maximum(x @ w1 + b1, 0.0)
    return h @ w2 + b2


if __name__ == "__main__":
    key = jax.random.PRNGKey(0)
    pkey, xkey, xkey2 = jax.random.split(key, 3)
    w1, b1, w2, b2 = init_params(pkey)
    w1T, b1p, w2T, b2p = prepare_params(w1, b1, w2, b2)   # hoisted, one-time

    # Small case matching the module's typical call (B=2, 4 features).
    batch = 2
    x = jax.random.normal(xkey, (batch, NUM_INPUT_TEMP_FEATURES), jnp.float32)
    out = jax.block_until_ready(heat_therapy_forward(x, w1T, b1p, w2T, b2p))
    ref = reference_forward(x, w1, b1, w2, b2)
    assert out.shape == (batch, NUM_OUTPUT_FEATURES)
    assert jnp.allclose(out, ref, atol=1e-5, rtol=1e-5)

    # Second case exercising padding + multi-tile grid (grid_b > 1).
    batch2 = TILE_B_MAX + 3
    x2 = jax.random.normal(xkey2, (batch2, NUM_INPUT_TEMP_FEATURES), jnp.float32)
    out2 = jax.block_until_ready(heat_therapy_forward(x2, w1T, b1p, w2T, b2p))
    ref2 = reference_forward(x2, w1, b1, w2, b2)
    assert out2.shape == (batch2, NUM_OUTPUT_FEATURES)
    assert jnp.allclose(out2, ref2, atol=1e-4, rtol=1e-4)

    print("KERNEL_OK")
</pallas_src>

<mosaic_0001>
module attributes {stable_mosaic.version = 11 : i64} {
  func.func @_mlp_kernel(%arg0: i32, %arg1: memref<8x256xf32, #tpu.memory_space<vmem>>, %arg2: memref<32x8xf32, #tpu.memory_space<vmem>>, %arg3: memref<32x1xf32, #tpu.memory_space<vmem>>, %arg4: memref<8x32xf32, #tpu.memory_space<vmem>>, %arg5: memref<8x1xf32, #tpu.memory_space<vmem>>, %arg6: memref<8x256xf32, #tpu.memory_space<vmem>>) attributes {dimension_semantics = [#tpu.dimension_semantics<parallel>], iteration_bounds = array<i64: 1>, scalar_prefetch = 0 : i64, scratch_operands = 0 : i64, tpu.core_type = #tpu.core_type<tc>, window_params = [{transform_indices = @transform_0, window_bounds = array<i64: 8, 256>}, {pipeline_mode = #tpu.pipeline_mode<synchronous>, transform_indices = @transform_1, window_bounds = array<i64: 32, 8>}, {pipeline_mode = #tpu.pipeline_mode<synchronous>, transform_indices = @transform_2, window_bounds = array<i64: 32, 1>}, {pipeline_mode = #tpu.pipeline_mode<synchronous>, transform_indices = @transform_3, window_bounds = array<i64: 8, 32>}, {pipeline_mode = #tpu.pipeline_mode<synchronous>, transform_indices = @transform_4, window_bounds = array<i64: 8, 1>}, {transform_indices = @transform_5, window_bounds = array<i64: 8, 256>}]} {
    %c0 = arith.constant 0 : index
    %c0_0 = arith.constant 0 : index
    %0 = vector.load %arg1[%c0, %c0_0] : memref<8x256xf32, #tpu.memory_space<vmem>>, vector<8x256xf32>
    %c0_1 = arith.constant 0 : index
    %c0_2 = arith.constant 0 : index
    %1 = vector.load %arg2[%c0_1, %c0_2] : memref<32x8xf32, #tpu.memory_space<vmem>>, vector<32x8xf32>
    %cst = arith.constant dense<0.000000e+00> : vector<32x256xf32>
    %2 = tpu.matmul %1, %0, %cst {dimension_numbers = #tpu.dot_dimension_numbers<[1], [0], [0], [1], [0, 0, 1, 1], [], []>} : vector<32x8xf32>, vector<8x256xf32>, vector<32x256xf32> -> vector<32x256xf32>
    %c0_3 = arith.constant 0 : index
    %c0_4 = arith.constant 0 : index
    %3 = vector.load %arg3[%c0_3, %c0_4] : memref<32x1xf32, #tpu.memory_space<vmem>>, vector<32x1xf32>
    %4 = vector.broadcast %3 : vector<32x1xf32> to vector<32x256xf32>
    %5 = arith.addf %2, %4 : vector<32x256xf32>
    %cst_5 = arith.constant 0.000000e+00 : f32
    %6 = vector.broadcast %cst_5 : f32 to vector<32x256xf32>
    %7 = arith.maximumf %5, %6 : vector<32x256xf32>
    %c0_6 = arith.constant 0 : index
    %c0_7 = arith.constant 0 : index
    %8 = vector.load %arg4[%c0_6, %c0_7] : memref<8x32xf32, #tpu.memory_space<vmem>>, vector<8x32xf32>
    %cst_8 = arith.constant dense<0.000000e+00> : vector<8x256xf32>
    %9 = tpu.matmul %8, %7, %cst_8 {dimension_numbers = #tpu.dot_dimension_numbers<[1], [0], [0], [1], [0, 0, 1, 1], [], []>} : vector<8x32xf32>, vector<32x256xf32>, vector<8x256xf32> -> vector<8x256xf32>
    %c0_9 = arith.constant 0 : index
    %c0_10 = arith.constant 0 : index
    %10 = vector.load %arg5[%c0_9, %c0_10] : memref<8x1xf32, #tpu.memory_space<vmem>>, vector<8x1xf32>
    %11 = vector.broadcast %10 : vector<8x1xf32> to vector<8x256xf32>
    %12 = arith.addf %9, %11 : vector<8x256xf32>
    %c0_11 = arith.constant 0 : index
    %c0_12 = arith.constant 0 : index
    %13 = vector.load %arg6[%c0_11, %c0_12] : memref<8x256xf32, #tpu.memory_space<vmem>>, vector<8x256xf32>
    tpu.vector_store %arg6[%c0_11, %c0_12], %12 {strides = array<i32>} : memref<8x256xf32, #tpu.memory_space<vmem>>, vector<8x256xf32>,
    return
  }
  func.func @transform_0(%arg0: i32) -> (i32, i32) {
    %c0_i32 = arith.constant 0 : i32
    %c0_i32_0 = arith.constant 0 : i32
    return %c0_i32, %arg0 : i32, i32
  }
  func.func @transform_1(%arg0: i32) -> (i32, i32) {
    %c0_i32 = arith.constant 0 : i32
    %c0_i32_0 = arith.constant 0 : i32
    %c0_i32_1 = arith.constant 0 : i32
    return %c0_i32, %c0_i32_0 : i32, i32
  }
  func.func @transform_2(%arg0: i32) -> (i32, i32) {
    %c0_i32 = arith.constant 0 : i32
    %c0_i32_0 = arith.constant 0 : i32
    %c0_i32_1 = arith.constant 0 : i32
    return %c0_i32, %c0_i32_0 : i32, i32
  }
  func.func @transform_3(%arg0: i32) -> (i32, i32) {
    %c0_i32 = arith.constant 0 : i32
    %c0_i32_0 = arith.constant 0 : i32
    %c0_i32_1 = arith.constant 0 : i32
    return %c0_i32, %c0_i32_0 : i32, i32
  }
  func.func @transform_4(%arg0: i32) -> (i32, i32) {
    %c0_i32 = arith.constant 0 : i32
    %c0_i32_0 = arith.constant 0 : i32
    %c0_i32_1 = arith.constant 0 : i32
    return %c0_i32, %c0_i32_0 : i32, i32
  }
  func.func @transform_5(%arg0: i32) -> (i32, i32) {
    %c0_i32 = arith.constant 0 : i32
    %c0_i32_0 = arith.constant 0 : i32
    return %c0_i32, %arg0 : i32, i32
  }
}

</mosaic_0001>

<bundles_post_ra>
// kernel: tpu_custom_call.1
= control target key start
LH: loop header
LB: loop body
LE: loop exit
PB: predicated region body
PF: predicated region fallthrough
CT: control target
= control target key end

     0   :  { %vm51_vm0 = vcmask 64512   ;;  %v301_v3 = vmov 0.0   ;;  %v302_v4 = vmov 0   ;;  %s386_s0 = inlined_call_operand.vmem [shape: f32[8,256], index: 0, kind: input, shape index: {}]   ;;  %s387_s1 = inlined_call_operand.vmem [shape: f32[32,8], index: 1, kind: input, shape index: {}]   ;;  %s388_s2 = inlined_call_operand.vmem [shape: f32[32,1], index: 2, kind: input, shape index: {}]   ;;  %s389_s3 = inlined_call_operand.vmem [shape: f32[8,32], index: 3, kind: input, shape index: {}]   ;;  %s390_s4 = inlined_call_operand.vmem [shape: f32[8,1], index: 4, kind: input, shape index: {}]   ;;  %s391_s5 = inlined_call_operand.hbm [shape: f32[8,256], index: 5, kind: output, shape index: {}]  }
   0x1   :  { %v22_v0 = vld [vmem:[%s386_s0 + $0x8] sm:$0xff]  ;;  %v21_v1 = vld [vmem:[%s386_s0] sm:$0xff]  ;;  %128 = vmatprep.mubr.f32.mxu0 %v301_v3  ;;  %275 = vset.pattern.permute.xlu0 %v302_v4  ;;  %v29_v6 = vld [vmem:[%s388_s2 + $0x10] sm:$0xff] }
   0x2   :  { %v23_v2 = vld [vmem:[%s387_s1] sm:$0xff]  ;;  %64 = vmatprep.subr.mxu0 %v22_v0 }
   0x3   :  { %65 = vmatpush1.msra.mxu0 %v21_v1  ;;  %v27_v5 = vld [vmem:[%s388_s2] sm:$0xff] }
   0x4   :  { %259 = vmatmul.mubr.msk.f32.vlgmr.msra.gmra.mrb[0].mxu0 %vm51_vm0, %v23_v2  ;;  %33 = vperm.xlu0 %275, %v27_v5  }
   0x5   :  { %10 = vsyncpa [#allocation3], 0  ;;  %134 = vmatprep.mubr.f32.mxu0 %v301_v3  ;;  %v24_v7 = vld [vmem:[%s387_s1 + $0x8] sm:$0xff]  ;;  %276 = vset.pattern.permute.xlu1 %v302_v4  ;;  %v30_v9 = vld [vmem:[%s388_s2 + $0x18] sm:$0xff]  ;;  %vm168_vm1 = vcmask 261120  }
   0x6   :  { %v28_v8 = vld [vmem:[%s388_s2 + $0x8] sm:$0xff]  ;;  %43 = vperm.xlu1 %276, %v29_v6   ;;  %236 = vmatprep.mubr.f32.mxu1 %v301_v3  ;;  %v25_v10 = vld [vmem:[%s387_s1 + $0x10] sm:$0xff]  ;;  %v162_v11 = vld [vmem:[%s390_s4] sm:$0xff]  ;;  %s303_s4 = smov [#allocation2]  }
   0x7   :  { %v26_v12 = vld [vmem:[%s387_s1 + $0x18] sm:$0xff]  ;;  %v161_v45 = vld [vmem:[%s389_s3] sm:$0xff]  ;;  %s251_s14 = sshll.u32 %s303_s4, 4  ;;  %s252_s14 = int_to_ptr.vmem [resolvable:$true] %s251_s14 }
   0x8   :  { %260 = vmatmul.mubr.msk.f32.gmra.mrb[2].mxu0 %vm51_vm0, %v24_v7  ;;  %38 = vperm.xlu0 %275, %v28_v8   ;;  %s277_s15 = scalar_lea.vmem %s252_s14, 256  ;;  %p282_p1 = scmp.lt.s32.totalorder %s252_s14, %s252_s14 }
   0x9   :  { %140 = vmatprep.mubr.f32.mxu0 %v301_v3  ;;  %p278_p0 = scmp.ne.s32.totalorder %s252_s14, %s277_s15  ;;  %p283_p2 = scmp.lt.s32.totalorder %s277_s15, %s277_s15 }
   0xa   :  { %48 = vperm.xlu1 %276, %v30_v9  }
   0xb   :  { %p284_p3 = por %p283_p2, %p282_p1 }
   0xc   :  { %261 = vmatmul.mubr.msk.f32.gmra.mrb[4].mxu0 %vm51_vm0, %v25_v10  ;;  %165 = vperm.xlu0 %275, %v162_v11  }
   0xd   :  { %146 = vmatprep.mubr.f32.mxu0 %v301_v3  ;;  %p285_p4 = pnand %p284_p3, %p278_p0 }
  0x10   :  { %262 = vmatmul.mubr.msk.f32.gmra.mrb[6].mxu0 %vm51_vm0, %v26_v12 }
  0x83   :  { %v34_v13 = vpop.permute.xlu0 %33 }
  0x85   :  { %v44_v22 = vpop.permute.xlu1 %43 }
  0x87   :  { %v39_v17 = vpop.permute.xlu0 %38 }
  0x89   :  { %v49_v33 = vpop.permute.xlu1 %48 }
  0x8b   :  { %v166_v46 = vpop.permute.xlu0 %165 }
  0xd7   :  { %v130_v14 = vpop.f32.mrb[0].mxu0 }
  0xd8   :  { %v132_v15 = vpop.f32.mrb[1].mxu0  ;;  %v131_v16 = vadd.f32 %v130_v14, %v34_v13 }
  0xd9   :  { %v133_v18 = vadd.f32 %v132_v15, %v34_v13 }
  0xda   :  { %v153_v24 = vmax.f32 %v131_v16, 0.0 }
  0xdb   :  { %v136_v19 = vpop.f32.mrb[2].mxu0  ;;  %v154_v26 = vmax.f32 %v133_v18, 0.0 }
  0xdc   :  { %v137_v20 = vadd.f32 %v136_v19, %v39_v17  ;;  %v138_v21 = vpop.f32.mrb[3].mxu0 }
  0xdd   :  { %v139_v23 = vadd.f32 %v138_v21, %v39_v17 }
  0xde   :  { %v155_v25 = vmax.f32 %v137_v20, 0.0 }
  0xdf   :  { %v156_v27 = vmax.f32 %v139_v23, 0.0  ;;  %v142_v28 = vpop.f32.mrb[4].mxu0 }
  0xe0   :  { %v144_v29 = vpop.f32.mrb[5].mxu0  ;;  %v266_v30 = vpack.c.bf16 %v155_v25, %v153_v24  ;;  %v143_v32 = vadd.f32 %v142_v28, %v44_v22 }
  0xe1   :  { %v264_v31 = vpack.c.bf16 %v156_v27, %v154_v26  ;;  %v145_v34 = vadd.f32 %v144_v29, %v44_v22 }
  0xe2   :  { %v157_v39 = vmax.f32 %v143_v32, 0.0 }
  0xe3   :  { %v148_v35 = vpop.f32.mrb[6].mxu0  ;;  %265 = vmatprep.subr.bf16.mxu1 %v264_v31  ;;  %v158_v41 = vmax.f32 %v145_v34, 0.0 }
  0xe4   :  { %v149_v36 = vadd.f32 %v148_v35, %v49_v33  ;;  %v150_v37 = vpop.f32.mrb[7].mxu0  ;;  %267 = vmatpush1.bf16.msra.mxu1 %v266_v30 }
  0xe5   :  { %v151_v38 = vadd.f32 %v150_v37, %v49_v33 }
  0xe6   :  { %v159_v40 = vmax.f32 %v149_v36, 0.0 }
  0xe7   :  { %v160_v42 = vmax.f32 %v151_v38, 0.0 }
  0xe8   :  { %v270_v43 = vpack.c.bf16 %v159_v40, %v157_v39 }
  0xe9   :  { %v268_v44 = vpack.c.bf16 %v160_v42, %v158_v41 }
  0xeb   :  { %269 = vmatprep.subr.bf16.mxu1 %v268_v44 }
  0xec   :  { %271 = vmatpush1.bf16.msra.mxu1 %v270_v43 }
  0xef   :  { %263 = vmatmul.mubr.msk.f32.vlgmr.msra.gmra.mrb[0].mxu1 %vm168_vm1, %v161_v45 }
 0x1c2   :  { %v238_v47 = vpop.f32.mrb[0].mxu1 }
 0x1c3   :  { %v239_v48 = vadd.f32 %v238_v47, %v166_v46  ;;  %v240_v49 = vpop.f32.mrb[1].mxu1 }
 0x1c4   :  { %v241_v50 = vadd.f32 %v240_v49, %v166_v46 }
 0x1c5   :  { %243 = vst [vmem:[#allocation2] sm:$0xff] %v239_v48 }
 0x1c6   :  { %244 = vst [vmem:[#allocation2 + $0x8] sm:$0xff] %v241_v50 }
 0x1c7   :  { %288 = shalt.err (!%p285_p4)
}
 0x1c8   :  { %s289_s17 = scalar_lea.hbm %s391_s5, 256 }
 0x1c9   :  { %p290_p5 = scmp.ne.s32.totalorder %s391_s5, %s289_s17  ;;  %p293_p6 = scmp.lt.u32.totalorder %s289_s17, %s391_s5 }
 0x1cb   :  { %p295_p7 = pnand %p293_p6, %p290_p5 }
 0x1cd   :  { %298 = shalt.err (!%p295_p7)
}
 0x1ce   :  { %254 = dma.vmem_to_hbm [thread:$0]  %s252_s14, 256, %s391_s5, [#allocation3]  }
 0x1cf   :  { %299 = dma.done.wait [#allocation3], 256  }
 0x1d0   :  { %300 = vsyncadd [#allocation3], 4294967040 }
 0x1d1   :  { %258 = vsyncpa [#allocation3], 1 }

</bundles_post_ra>
